<compile_context>
chip_gen: v7x
topology: tpu7x:2x2x1
jax: 0.10.0
libtpu: 0.0.40
codegen_flags: <defaults>
</compile_context>

<pallas_src>
import math

import jax
import jax.numpy as jnp
from jax import lax
from jax.experimental import pallas as pl
from jax.experimental.pallas import tpu as pltpu


def _round_up(x, m):
    return ((x + m - 1) // m) * m


# ---------------------------------------------------------------------------
# Stage 1: encoder heads + scaled dot-product attention + concat([tgt, ctx])
#          -> x_cat (B*St, 2H) bf16 in HBM
# ---------------------------------------------------------------------------
def encoder_ctx_kernel(
    emb_src_ref,   # (nb, Ss, H) bf16
    emb_tgt_ref,   # (nb, St, H) bf16
    w_attn_ref,    # (H, H)      bf16
    b_attn_ref,    # (1, H)      f32
    w_enc_ref,     # (H, H)      bf16
    b_enc_ref,     # (1, H)      f32
    xcat_ref,      # (nb*St, 2H) bf16 output block
):
    nb, Ss, H = emb_src_ref.shape
    St = emb_tgt_ref.shape[1]

    src2d = emb_src_ref[...].reshape(nb * Ss, H)          # bf16
    tgt3 = emb_tgt_ref[...]                               # (nb, St, H) bf16

    # encoder heads (bf16 MXU, f32 accumulation)
    attn = jnp.dot(src2d, w_attn_ref[...],
                   preferred_element_type=jnp.float32) + b_attn_ref[...]
    sso = jnp.dot(src2d, w_enc_ref[...],
                  preferred_element_type=jnp.float32) + b_enc_ref[...]
    attn3 = attn.reshape(nb, Ss, H).astype(jnp.bfloat16)
    sso3 = sso.reshape(nb, Ss, H).astype(jnp.bfloat16)

    # scaled dot-product scores: contract last dims directly (no .T / XLU)
    scores = lax.dot_general(
        tgt3, attn3,
        dimension_numbers=(((2,), (2,)), ((0,), (0,))),
        preferred_element_type=jnp.float32) * (1.0 / math.sqrt(H))

    # softmax (f32 stats; divide via EUP reciprocal)
    m = jnp.max(scores, axis=-1, keepdims=True)
    p = jnp.exp(scores - m)
    inv = pl.reciprocal(jnp.sum(p, axis=-1, keepdims=True), approx=True)
    p = (p * inv).astype(jnp.bfloat16)

    ctx = lax.dot_general(
        p, sso3,
        dimension_numbers=(((2,), (1,)), ((0,), (0,))),
        preferred_element_type=jnp.float32)                # (nb, St, H) f32

    xcat_ref[:, :H] = tgt3.reshape(nb * St, H)
    xcat_ref[:, H:] = ctx.reshape(nb * St, H).astype(jnp.bfloat16)


def _encode_context(emb_src, emb_tgt, params, *, batch_rows_target=512):
    """Returns x_cat (B*St, 2H) bf16."""
    B, Ss, H = emb_src.shape
    St = emb_tgt.shape[1]

    # largest divisor of B keeping both per-step row counts modest
    nb = 1
    for d in range(1, B + 1):
        if B % d == 0 and d * max(Ss, St) <= batch_rows_target:
            nb = d

    return pl.pallas_call(
        encoder_ctx_kernel,
        out_shape=jax.ShapeDtypeStruct((B * St, 2 * H), jnp.bfloat16),
        grid_spec=pltpu.PrefetchScalarGridSpec(
            num_scalar_prefetch=0,
            grid=(B // nb,),
            in_specs=[
                pl.BlockSpec((nb, Ss, H), lambda i: (i, 0, 0)),   # emb_src
                pl.BlockSpec((nb, St, H), lambda i: (i, 0, 0)),   # emb_tgt
                pl.BlockSpec((H, H), lambda i: (0, 0)),           # w_attn
                pl.BlockSpec((1, H), lambda i: (0, 0)),           # b_attn
                pl.BlockSpec((H, H), lambda i: (0, 0)),           # w_enc
                pl.BlockSpec((1, H), lambda i: (0, 0)),           # b_enc
            ],
            out_specs=pl.BlockSpec((nb * St, 2 * H), lambda i: (i, 0)),
        ),
        compiler_params=pltpu.CompilerParams(
            dimension_semantics=("parallel",)),
    )(
        emb_src, emb_tgt,
        params["w_attn"], params["b_attn"],
        params["w_enc"], params["b_enc"],
    )


# ---------------------------------------------------------------------------
# Stage 2: pure tiled GEMM  logits = x_cat @ w_out + b_out
# ---------------------------------------------------------------------------
def vocab_proj_kernel(xcat_ref, w_out_ref, b_out_ref, out_ref):
    acc = jnp.dot(xcat_ref[...], w_out_ref[...],
                  preferred_element_type=jnp.float32) + b_out_ref[...]
    out_ref[...] = acc.astype(out_ref.dtype)


def _vocab_project(x_cat, w_out, b_out, *, row_block=512, v_block=1024,
                   logits_dtype=jnp.float32):
    rows, H2 = x_cat.shape
    V = w_out.shape[1]
    assert w_out.shape[0] == H2

    # --- tile selection -----------------------------------------------------
    TM = min(row_block, _round_up(rows, 8))
    TM = _round_up(TM, 8)
    rows_p = _round_up(rows, TM)

    Vt = min(v_block, V)
    while V % Vt != 0:            # keep Vt a 128-multiple divisor of V
        Vt -= 128
    assert Vt >= 128 and V % Vt == 0

    if rows_p != rows:            # pad the row tail (padded rows discarded)
        x_cat = jnp.pad(x_cat, ((0, rows_p - rows), (0, 0)))

    # --- VMEM budget from the actual block set (double buffers + headroom) --
    itemsize_out = jnp.dtype(logits_dtype).itemsize
    per_step = (TM * H2 * 2) + (H2 * Vt * 2) + (Vt * 4) + (TM * Vt * itemsize_out)
    vmem_limit = int(min(96 * 2**20, max(16 * 2**20, 4 * per_step)))

    out = pl.pallas_call(
        vocab_proj_kernel,
        out_shape=jax.ShapeDtypeStruct((rows_p, V), logits_dtype),
        grid_spec=pltpu.PrefetchScalarGridSpec(
            num_scalar_prefetch=0,
            grid=(rows_p // TM, V // Vt),
            in_specs=[
                pl.BlockSpec((TM, H2), lambda i, v: (i, 0)),      # x_cat rows
                pl.BlockSpec((H2, Vt), lambda i, v: (0, v)),      # w_out tile
                pl.BlockSpec((1, Vt), lambda i, v: (0, v)),       # b_out tile
            ],
            out_specs=pl.BlockSpec((TM, Vt), lambda i, v: (i, v)),
        ),
        compiler_params=pltpu.CompilerParams(
            # no inter-step dependency -> both axes parallel (megacore-friendly)
            dimension_semantics=("parallel", "parallel"),
            vmem_limit_bytes=vmem_limit,
        ),
    )(x_cat, w_out, b_out)
    return out[:rows]


# ---------------------------------------------------------------------------
# NMTModel.forward
# ---------------------------------------------------------------------------
def nmt_forward(source, target, params, *, row_block=512, v_block=1024,
                logits_dtype=jnp.float32):
    """source, target: int32 token ids [B, Ss] / [B, St]. Returns [B, St, V]."""
    # Embedding gathers kept as plain-JAX glue (see TODO at top of file).
    emb_src = params["emb_src_table"][source]            # (B, Ss, H) bf16
    emb_tgt = params["emb_tgt_table"][target]            # (B, St, H) bf16

    B, Ss, H = emb_src.shape
    St = emb_tgt.shape[1]
    V = params["w_out"].shape[1]
    assert params["w_out"].shape[0] == 2 * H
    assert H % 128 == 0 and V % 128 == 0, "H and V must be multiples of 128"
    assert Ss % 8 == 0 and St % 8 == 0, "sequence lengths must be multiples of 8"

    x_cat = _encode_context(emb_src, emb_tgt, params)     # (B*St, 2H) bf16
    out_flat = _vocab_project(x_cat, params["w_out"], params["b_out"],
                              row_block=row_block, v_block=v_block,
                              logits_dtype=logits_dtype)  # (B*St, V)
    return out_flat.reshape(B, St, V)


# ---------------------------------------------------------------------------
# Plain-JAX reference (mirrors the kernel's bf16 operand rounding)
# ---------------------------------------------------------------------------
def nmt_reference(source, target, params):
    f32 = jnp.float32
    emb_src = params["emb_src_table"][source].astype(f32)
    emb_tgt = params["emb_tgt_table"][target].astype(f32)
    H = emb_src.shape[-1]

    attn = emb_src @ params["w_attn"].astype(f32) + params["b_attn"]
    sso = emb_src @ params["w_enc"].astype(f32) + params["b_enc"]
    attn = attn.astype(jnp.bfloat16).astype(f32)
    sso = sso.astype(jnp.bfloat16).astype(f32)

    scores = jnp.einsum("btd,bsd->bts", emb_tgt, attn) / math.sqrt(H)
    p = jax.nn.softmax(scores, axis=-1)
    p = p.astype(jnp.bfloat16).astype(f32)
    ctx = jnp.einsum("bts,bsd->btd", p, sso)
    ctx = ctx.astype(jnp.bfloat16).astype(f32)

    x_cat = jnp.concatenate([emb_tgt, ctx], axis=-1)
    return x_cat @ params["w_out"].astype(f32) + params["b_out"]


def init_params(key, vocab_src, vocab_tgt, H, V):
    ks = jax.random.split(key, 7)
    s = 0.1
    bf = jnp.bfloat16
    return {
        "emb_src_table": (s * jax.random.normal(ks[0], (vocab_src, H))).astype(bf),
        "emb_tgt_table": (s * jax.random.normal(ks[1], (vocab_tgt, H))).astype(bf),
        "w_attn": (s * jax.random.normal(ks[2], (H, H))).astype(bf),
        "b_attn": jnp.zeros((1, H), jnp.float32),
        "w_enc": (s * jax.random.normal(ks[3], (H, H))).astype(bf),
        "b_enc": jnp.zeros((1, H), jnp.float32),
        # fused output projection: rows [0:H] act on emb_tgt, rows [H:2H] on ctx
        "w_out": (s * jax.random.normal(ks[4], (2 * H, V))).astype(bf),
        "b_out": (0.01 * jax.random.normal(ks[5], (1, V))).astype(jnp.float32),
    }


if __name__ == "__main__":
    # Small but TPU-aligned shapes: lane dims (H, V) multiples of 128,
    # sublane dims (Ss, St) multiples of 8.
    B, Ss, St, H, V = 2, 8, 8, 128, 512
    vocab_src = vocab_tgt = 128

    key = jax.random.PRNGKey(0)
    kp, k1, k2 = jax.random.split(key, 3)
    params = init_params(kp, vocab_src, vocab_tgt, H, V)
    source = jax.random.randint(k1, (B, Ss), 0, vocab_src, dtype=jnp.int32)
    target = jax.random.randint(k2, (B, St), 0, vocab_tgt, dtype=jnp.int32)

    out = nmt_forward(source, target, params)
    out = jax.block_until_ready(out)

    ref = nmt_reference(source, target, params)
    assert out.shape == (B, St, V)
    max_err = float(jnp.max(jnp.abs(out - ref)))
    assert jnp.allclose(out, ref, atol=2e-2, rtol=2e-2), (
        f"mismatch vs reference (max abs err {max_err})")

    print("KERNEL_OK")
</pallas_src>

<mosaic_0001>
module attributes {stable_mosaic.version = 11 : i64} {
  func.func @encoder_ctx_kernel(%arg0: i32, %arg1: memref<2x8x128xbf16, #tpu.memory_space<vmem>>, %arg2: memref<2x8x128xbf16, #tpu.memory_space<vmem>>, %arg3: memref<128x128xbf16, #tpu.memory_space<vmem>>, %arg4: memref<1x128xf32, #tpu.memory_space<vmem>>, %arg5: memref<128x128xbf16, #tpu.memory_space<vmem>>, %arg6: memref<1x128xf32, #tpu.memory_space<vmem>>, %arg7: memref<16x256xbf16, #tpu.memory_space<vmem>>) attributes {dimension_semantics = [#tpu.dimension_semantics<parallel>], iteration_bounds = array<i64: 1>, scalar_prefetch = 0 : i64, scratch_operands = 0 : i64, tpu.core_type = #tpu.core_type<tc>, window_params = [{transform_indices = @transform_0, window_bounds = array<i64: 2, 8, 128>}, {transform_indices = @transform_1, window_bounds = array<i64: 2, 8, 128>}, {pipeline_mode = #tpu.pipeline_mode<synchronous>, transform_indices = @transform_2, window_bounds = array<i64: 128, 128>}, {pipeline_mode = #tpu.pipeline_mode<synchronous>, transform_indices = @transform_3, window_bounds = array<i64: 1, 128>}, {pipeline_mode = #tpu.pipeline_mode<synchronous>, transform_indices = @transform_4, window_bounds = array<i64: 128, 128>}, {pipeline_mode = #tpu.pipeline_mode<synchronous>, transform_indices = @transform_5, window_bounds = array<i64: 1, 128>}, {transform_indices = @transform_6, window_bounds = array<i64: 16, 256>}]} {
    %c0 = arith.constant 0 : index
    %c0_0 = arith.constant 0 : index
    %c0_1 = arith.constant 0 : index
    %0 = vector.load %arg1[%c0, %c0_0, %c0_1] : memref<2x8x128xbf16, #tpu.memory_space<vmem>>, vector<2x8x128xbf16>
    %1 = vector.shape_cast %0 : vector<2x8x128xbf16> to vector<16x128xbf16>
    %c0_2 = arith.constant 0 : index
    %c0_3 = arith.constant 0 : index
    %c0_4 = arith.constant 0 : index
    %2 = vector.load %arg2[%c0_2, %c0_3, %c0_4] : memref<2x8x128xbf16, #tpu.memory_space<vmem>>, vector<2x8x128xbf16>
    %c0_5 = arith.constant 0 : index
    %c0_6 = arith.constant 0 : index
    %3 = vector.load %arg3[%c0_5, %c0_6] : memref<128x128xbf16, #tpu.memory_space<vmem>>, vector<128x128xbf16>
    %cst = arith.constant dense<0.000000e+00> : vector<16x128xf32>
    %4 = tpu.matmul %1, %3, %cst {dimension_numbers = #tpu.dot_dimension_numbers<[1], [0], [0], [1], [0, 0, 1, 1], [], []>} : vector<16x128xbf16>, vector<128x128xbf16>, vector<16x128xf32> -> vector<16x128xf32>
    %c0_7 = arith.constant 0 : index
    %c0_8 = arith.constant 0 : index
    %5 = vector.load %arg4[%c0_7, %c0_8] : memref<1x128xf32, #tpu.memory_space<vmem>>, vector<1x128xf32>
    %6 = vector.broadcast %5 : vector<1x128xf32> to vector<16x128xf32>
    %7 = arith.addf %4, %6 : vector<16x128xf32>
    %c0_9 = arith.constant 0 : index
    %c0_10 = arith.constant 0 : index
    %8 = vector.load %arg5[%c0_9, %c0_10] : memref<128x128xbf16, #tpu.memory_space<vmem>>, vector<128x128xbf16>
    %cst_11 = arith.constant dense<0.000000e+00> : vector<16x128xf32>
    %9 = tpu.matmul %1, %8, %cst_11 {dimension_numbers = #tpu.dot_dimension_numbers<[1], [0], [0], [1], [0, 0, 1, 1], [], []>} : vector<16x128xbf16>, vector<128x128xbf16>, vector<16x128xf32> -> vector<16x128xf32>
    %c0_12 = arith.constant 0 : index
    %c0_13 = arith.constant 0 : index
    %10 = vector.load %arg6[%c0_12, %c0_13] : memref<1x128xf32, #tpu.memory_space<vmem>>, vector<1x128xf32>
    %11 = vector.broadcast %10 : vector<1x128xf32> to vector<16x128xf32>
    %12 = arith.addf %9, %11 : vector<16x128xf32>
    %13 = vector.shape_cast %7 : vector<16x128xf32> to vector<2x8x128xf32>
    %14 = arith.truncf %13 : vector<2x8x128xf32> to vector<2x8x128xbf16>
    %15 = vector.shape_cast %12 : vector<16x128xf32> to vector<2x8x128xf32>
    %16 = arith.truncf %15 : vector<2x8x128xf32> to vector<2x8x128xbf16>
    %cst_14 = arith.constant dense<0.000000e+00> : vector<2x8x8xf32>
    %17 = tpu.matmul %2, %14, %cst_14 {dimension_numbers = #tpu.dot_dimension_numbers<[2], [2], [1], [1], [0, 0, 0, 1, 1, 1], [0], [0]>} : vector<2x8x128xbf16>, vector<2x8x128xbf16>, vector<2x8x8xf32> -> vector<2x8x8xf32>
    %cst_15 = arith.constant 0.0883883461 : f32
    %18 = vector.broadcast %cst_15 : f32 to vector<2x8x8xf32>
    %19 = arith.mulf %17, %18 : vector<2x8x8xf32>
    %cst_16 = arith.constant dense<0xFF800000> : vector<2x8xf32>
    %20 = vector.multi_reduction <maximumf>, %19, %cst_16 [2] : vector<2x8x8xf32> to vector<2x8xf32>
    %21 = vector.shape_cast %20 : vector<2x8xf32> to vector<2x8x1xf32>
    %22 = vector.broadcast %21 : vector<2x8x1xf32> to vector<2x8x8xf32>
    %23 = arith.subf %19, %22 : vector<2x8x8xf32>
    %24 = math.exp %23 : vector<2x8x8xf32>
    %cst_17 = arith.constant dense<0.000000e+00> : vector<2x8xf32>
    %25 = vector.multi_reduction <add>, %24, %cst_17 [2] : vector<2x8x8xf32> to vector<2x8xf32>
    %26 = vector.shape_cast %25 : vector<2x8xf32> to vector<2x8x1xf32>
    %27 = tpu.reciprocal %26 {approx = true} : vector<2x8x1xf32> -> vector<2x8x1xf32>
    %28 = vector.broadcast %27 : vector<2x8x1xf32> to vector<2x8x8xf32>
    %29 = arith.mulf %24, %28 : vector<2x8x8xf32>
    %30 = arith.truncf %29 : vector<2x8x8xf32> to vector<2x8x8xbf16>
    %cst_18 = arith.constant dense<0.000000e+00> : vector<2x8x128xf32>
    %31 = tpu.matmul %30, %16, %cst_18 {dimension_numbers = #tpu.dot_dimension_numbers<[2], [1], [1], [2], [0, 0, 0, 1, 1, 2], [0], [0]>} : vector<2x8x8xbf16>, vector<2x8x128xbf16>, vector<2x8x128xf32> -> vector<2x8x128xf32>
    %32 = vector.shape_cast %2 : vector<2x8x128xbf16> to vector<16x128xbf16>
    %c0_19 = arith.constant 0 : index
    %c0_20 = arith.constant 0 : index
    %33 = vector.load %arg7[%c0_19, %c0_20] : memref<16x256xbf16, #tpu.memory_space<vmem>>, vector<16x128xbf16>
    tpu.vector_store %arg7[%c0_19, %c0_20], %32 {strides = array<i32>} : memref<16x256xbf16, #tpu.memory_space<vmem>>, vector<16x128xbf16>,
    %34 = vector.shape_cast %31 : vector<2x8x128xf32> to vector<16x128xf32>
    %35 = arith.truncf %34 : vector<16x128xf32> to vector<16x128xbf16>
    %c0_21 = arith.constant 0 : index
    %c128 = arith.constant 128 : index
    %36 = vector.load %arg7[%c0_21, %c128] : memref<16x256xbf16, #tpu.memory_space<vmem>>, vector<16x128xbf16>
    tpu.vector_store %arg7[%c0_21, %c128], %35 {strides = array<i32>} : memref<16x256xbf16, #tpu.memory_space<vmem>>, vector<16x128xbf16>,
    return
  }
  func.func @transform_0(%arg0: i32) -> (i32, i32, i32) {
    %c0_i32 = arith.constant 0 : i32
    %c0_i32_0 = arith.constant 0 : i32
    %c0_i32_1 = arith.constant 0 : i32
    return %arg0, %c0_i32, %c0_i32_0 : i32, i32, i32
  }
  func.func @transform_1(%arg0: i32) -> (i32, i32, i32) {
    %c0_i32 = arith.constant 0 : i32
    %c0_i32_0 = arith.constant 0 : i32
    %c0_i32_1 = arith.constant 0 : i32
    return %arg0, %c0_i32, %c0_i32_0 : i32, i32, i32
  }
  func.func @transform_2(%arg0: i32) -> (i32, i32) {
    %c0_i32 = arith.constant 0 : i32
    %c0_i32_0 = arith.constant 0 : i32
    %c0_i32_1 = arith.constant 0 : i32
    return %c0_i32, %c0_i32_0 : i32, i32
  }
  func.func @transform_3(%arg0: i32) -> (i32, i32) {
    %c0_i32 = arith.constant 0 : i32
    %c0_i32_0 = arith.constant 0 : i32
    %c0_i32_1 = arith.constant 0 : i32
    return %c0_i32, %c0_i32_0 : i32, i32
  }
  func.func @transform_4(%arg0: i32) -> (i32, i32) {
    %c0_i32 = arith.constant 0 : i32
    %c0_i32_0 = arith.constant 0 : i32
    %c0_i32_1 = arith.constant 0 : i32
    return %c0_i32, %c0_i32_0 : i32, i32
  }
  func.func @transform_5(%arg0: i32) -> (i32, i32) {
    %c0_i32 = arith.constant 0 : i32
    %c0_i32_0 = arith.constant 0 : i32
    %c0_i32_1 = arith.constant 0 : i32
    return %c0_i32, %c0_i32_0 : i32, i32
  }
  func.func @transform_6(%arg0: i32) -> (i32, i32) {
    %c0_i32 = arith.constant 0 : i32
    %c0_i32_0 = arith.constant 0 : i32
    return %arg0, %c0_i32 : i32, i32
  }
}

</mosaic_0001>

<bundles_post_ra>
// kernel: tpu_custom_call.1
= control target key start
LH: loop header
LB: loop body
LE: loop exit
PB: predicated region body
PF: predicated region fallthrough
CT: control target
= control target key end

     0   :  { %11 = vsyncpa [#allocation3], 0  ;;  %s994_s0 = inlined_call_operand.hbm [shape: bf16[2,8,128], index: 0, kind: input, shape index: {}]   ;;  %s995_s1 = inlined_call_operand.hbm [shape: bf16[2,8,128], index: 1, kind: input, shape index: {}]   ;;  %s996_s2 = inlined_call_operand.hbm [shape: bf16[128,128], index: 2, kind: input, shape index: {}]   ;;  %s997_s3 = inlined_call_operand.vmem [shape: f32[1,128], index: 3, kind: input, shape index: {}]   ;;  %s998_s4 = inlined_call_operand.hbm [shape: bf16[128,128], index: 4, kind: input, shape index: {}]   ;;  %s999_s5 = inlined_call_operand.vmem [shape: f32[1,128], index: 5, kind: input, shape index: {}]   ;;  %s1000_s6 = inlined_call_operand.hbm [shape: bf16[16,256], index: 6, kind: output, shape index: {}]  }
   0x1   :  { %12 = vsyncpa [#allocation6], 0 }
   0x2   :  { %13 = vsyncpa [#allocation9], 0 }
   0x3   :  { %14 = vsyncpa [#allocation4], 0  ;;  %s818_s21 = smov [#allocation5]   ;;  %s819_s23 = smov [#allocation2]  }
   0x4   :  { %s32_s22 = sshll.u32 %s818_s21, 4  ;;  %s20_s24 = sshll.u32 %s819_s23, 4  ;;  %s33_s22 = int_to_ptr.vmem [resolvable:$true] %s32_s22  ;;  %s864_s24 = int_to_ptr.vmem [resolvable:$true] %s20_s24 }
   0x5   :  { %s700_s27 = scalar_lea.hbm %s995_s1, 128 }
   0x6   :  { %p701_p0 = scmp.ne.s32.totalorder %s995_s1, %s700_s27  ;;  %p704_p1 = scmp.lt.u32.totalorder %s700_s27, %s995_s1 }
   0x8   :  { %p706_p2 = pnand %p704_p1, %p701_p0 }
   0xa   :  { %709 = shalt.err (!%p706_p2)
}
   0xb   :  { %s710_s8 = scalar_lea.vmem %s33_s22, 128  ;;  %p715_p4 = scmp.lt.s32.totalorder %s33_s22, %s33_s22 }
   0xc   :  { %p711_p3 = scmp.ne.s32.totalorder %s33_s22, %s710_s8  ;;  %p716_p5 = scmp.lt.s32.totalorder %s710_s8, %s710_s8 }
   0xe   :  { %p717_p6 = por %p716_p5, %p715_p4 }
  0x10   :  { %p718_p7 = pnand %p717_p6, %p711_p3 }
  0x12   :  { %721 = shalt.err (!%p718_p7)
}
  0x13   :  { %s820_s9 = smov 64   ;;  %s821_s10 = smov 4  }
  0x14   :  { %38 = dma.hbm_to_vmem [thread:$0]  %s995_s1, 128, %s33_s22, [#allocation6], %s820_s9, %s820_s9, %s821_s10  }
  0x15   :  { %s722_s15 = scalar_lea.hbm %s994_s0, 128 }
  0x16   :  { %p723_p8 = scmp.ne.s32.totalorder %s994_s0, %s722_s15  ;;  %p726_p9 = scmp.lt.u32.totalorder %s722_s15, %s994_s0 }
  0x18   :  { %p728_p10 = pnand %p726_p9, %p723_p8 }
  0x1a   :  { %731 = shalt.err (!%p728_p10)
}
  0x1b   :  { %s732_s20 = scalar_lea.vmem %s864_s24, 128  ;;  %p737_p12 = scmp.lt.s32.totalorder %s864_s24, %s864_s24 }
  0x1c   :  { %p733_p11 = scmp.ne.s32.totalorder %s864_s24, %s732_s20  ;;  %p738_p13 = scmp.lt.s32.totalorder %s732_s20, %s732_s20 }
  0x1e   :  { %p739_p0 = por %p738_p13, %p737_p12 }
  0x20   :  { %p740_p1 = pnand %p739_p0, %p733_p11 }
  0x22   :  { %743 = shalt.err (!%p740_p1)
}
  0x23   :  { %26 = dma.hbm_to_vmem [thread:$0]  %s994_s0, 128, %s864_s24, [#allocation3], %s820_s9, %s820_s9, %s821_s10  }
  0x24   :  { %s822_s22 = smov [#allocation7]   ;;  %s823_s25 = smov [#allocation8]  }
  0x25   :  { %s44_s23 = sshll.u32 %s822_s22, 4  ;;  %s58_s26 = sshll.u32 %s823_s25, 4  ;;  %s45_s23 = int_to_ptr.vmem [resolvable:$true] %s44_s23  ;;  %s901_s26 = int_to_ptr.vmem [resolvable:$true] %s58_s26 }
  0x26   :  { %s744_s29 = scalar_lea.hbm %s996_s2, 1024 }
  0x27   :  { %p745_p2 = scmp.ne.s32.totalorder %s996_s2, %s744_s29  ;;  %p748_p3 = scmp.lt.u32.totalorder %s744_s29, %s996_s2 }
  0x29   :  { %p750_p4 = pnand %p748_p3, %p745_p2 }
  0x2b   :  { %753 = shalt.err (!%p750_p4)
}
  0x2c   :  { %s754_s0 = scalar_lea.vmem %s45_s23, 1024  ;;  %p759_p6 = scmp.lt.s32.totalorder %s45_s23, %s45_s23 }
  0x2d   :  { %p755_p5 = scmp.ne.s32.totalorder %s45_s23, %s754_s0  ;;  %p760_p7 = scmp.lt.s32.totalorder %s754_s0, %s754_s0 }
  0x2f   :  { %p761_p8 = por %p760_p7, %p759_p6 }
  0x31   :  { %p762_p9 = pnand %p761_p8, %p755_p5 }
  0x33   :  { %765 = shalt.err (!%p762_p9)
}
  0x34   :  { %50 = dma.hbm_to_vmem [thread:$0]  %s996_s2, 1024, %s45_s23, [#allocation6], %s820_s9, %s820_s9, %s821_s10  }
  0x35   :  { %s766_s15 = scalar_lea.hbm %s998_s4, 1024 }
  0x36   :  { %p767_p10 = scmp.ne.s32.totalorder %s998_s4, %s766_s15  ;;  %p770_p11 = scmp.lt.u32.totalorder %s766_s15, %s998_s4 }
  0x38   :  { %p772_p12 = pnand %p770_p11, %p767_p10 }
  0x3a   :  { %775 = shalt.err (!%p772_p12)
}
  0x3b   :  { %s776_s20 = scalar_lea.vmem %s901_s26, 1024  ;;  %p781_p0 = scmp.lt.s32.totalorder %s901_s26, %s901_s26 }
  0x3c   :  { %p777_p13 = scmp.ne.s32.totalorder %s901_s26, %s776_s20  ;;  %p782_p1 = scmp.lt.s32.totalorder %s776_s20, %s776_s20 }
  0x3e   :  { %p783_p2 = por %p782_p1, %p781_p0 }
  0x40   :  { %p784_p3 = pnand %p783_p2, %p777_p13 }
  0x42   :  { %787 = shalt.err (!%p784_p3)
}
  0x43   :  { %64 = dma.hbm_to_vmem [thread:$0]  %s998_s4, 1024, %s901_s26, [#allocation9], %s820_s9, %s820_s9, %s821_s10  }
  0x44   :  { %810 = dma.done.wait [#allocation3], 128  }
  0x45   :  { %811 = vsyncadd [#allocation3], 4294967168 }
  0x46   :  { %812 = dma.done.wait [#allocation6], 1152  }
  0x47   :  { %813 = vsyncadd [#allocation6], 4294966144 }
  0x48   :  { %814 = dma.done.wait [#allocation9], 1024  }
  0x49   :  { %815 = vsyncadd [#allocation9], 4294966272  ;;  %v824_v0 = vmov 0.0   ;;  %vm825_vm0 = vmmov 0   ;;  %v675_v1 = vld [vmem:[#allocation7] sm:$0xff]   ;;  %v676_v2 = vld [vmem:[#allocation7 + $0x8] sm:$0xff]  }
  0x4a   :  { %600 = vmatprep.subr.bf16.mxu0 %v824_v0  ;;  %616 = vmatprep.mubr.msk.bf16.mxu0 %vm825_vm0, %v824_v0  ;;  %v677_v3 = vld [vmem:[#allocation7 + $0x10] sm:$0xff]   ;;  %v684_v4 = vld [vmem:[#allocation8] sm:$0xff]   ;;  %v678_v5 = vld [vmem:[#allocation7 + $0x18] sm:$0xff]   ;;  %vm428_vm1 = vcmask 1043456   ;;  %vm400_vm2 = vcmask 64512  }
  0x4b   :  { %620 = vmatprep.subr.bf16.mxu1 %v824_v0  ;;  %636 = vmatprep.mubr.msk.bf16.mxu1 %vm825_vm0, %v824_v0  ;;  %v685_v6 = vld [vmem:[#allocation8 + $0x8] sm:$0xff]   ;;  %v679_v7 = vld [vmem:[#allocation7 + $0x20] sm:$0xff]   ;;  %v686_v8 = vld [vmem:[#allocation8 + $0x10] sm:$0xff]  }
  0x4c   :  { %601 = vmatpush3.bf16.msra.mxu0 %v675_v1  ;;  %621 = vmatpush3.bf16.msra.mxu1 %v684_v4  ;;  %v680_v9 = vld [vmem:[#allocation7 + $0x28] sm:$0xff]   ;;  %v687_v10 = vld [vmem:[#allocation8 + $0x18] sm:$0xff]   ;;  %v681_v11 = vld [vmem:[#allocation7 + $0x30] sm:$0xff]  }
  0x4d   :  { %602 = vmatprep.subr.bf16.mxu0 %v824_v0  ;;  %622 = vmatprep.subr.bf16.mxu1 %v824_v0  ;;  %v688_v12 = vld [vmem:[#allocation8 + $0x20] sm:$0xff]   ;;  %v682_v13 = vld [vmem:[#allocation7 + $0x38] sm:$0xff]   ;;  %v689_v14 = vld [vmem:[#allocation8 + $0x28] sm:$0xff]  }
  0x4e   :  { %v683_v15 = vld [vmem:[#allocation2] sm:$0xff]   ;;  %v691_v17 = vld [vmem:[#allocation8 + $0x38] sm:$0xff]  }
  0x4f   :  { %v690_v16 = vld [vmem:[#allocation8 + $0x30] sm:$0xff]   ;;  %v82_v18 = vld [vmem:[#allocation5] sm:$0xf]  ;;  %v83_v19 = vld [vmem:[#allocation5 + $0x4] sm:$0xf] }
  0x50   :  { %603 = vmatpush3.bf16.msra.mxu0 %v676_v2  ;;  %623 = vmatpush3.bf16.msra.mxu1 %v685_v6  ;;  %518 = vst [vmem:[#allocation10] sm:$0xf] %v82_v18  ;;  %519 = vst [vmem:[#allocation10 + $0x8] sm:$0xf] %v83_v19  ;;  %v549_v20 = vld [vmem:[%s997_s3] ss:$0 sm:$0xff] }
  0x51   :  { %604 = vmatprep.subr.bf16.mxu0 %v824_v0  ;;  %624 = vmatprep.subr.bf16.mxu1 %v824_v0  ;;  %v559_v29 = vld [vmem:[%s999_s5] ss:$0 sm:$0xff]  ;;  %s826_s3 = smov [#allocation10]  }
  0x52   :  { %s535_s5 = sshll.u32 %s826_s3, 4  ;;  %s536_s5 = int_to_ptr.vmem [resolvable:$true] %s535_s5 }
  0x53   :  { %s788_s22 = scalar_lea.vmem %s536_s5, 256  ;;  %p793_p5 = scmp.lt.s32.totalorder %s536_s5, %s536_s5 }
  0x54   :  { %605 = vmatpush3.bf16.msra.mxu0 %v677_v3  ;;  %625 = vmatpush3.bf16.msra.mxu1 %v686_v8  ;;  %p789_p4 = scmp.ne.s32.totalorder %s536_s5, %s788_s22  ;;  %p794_p6 = scmp.lt.s32.totalorder %s788_s22, %s788_s22 }
  0x55   :  { %606 = vmatprep.subr.bf16.mxu0 %v824_v0  ;;  %626 = vmatprep.subr.bf16.mxu1 %v824_v0 }
  0x56   :  { %p795_p7 = por %p794_p6, %p793_p5 }
  0x58   :  { %607 = vmatpush3.bf16.msra.mxu0 %v678_v5  ;;  %627 = vmatpush3.bf16.msra.mxu1 %v687_v10  ;;  %p796_p8 = pnand %p795_p7, %p789_p4 }
  0x59   :  { %608 = vmatprep.subr.bf16.mxu0 %v824_v0  ;;  %628 = vmatprep.subr.bf16.mxu1 %v824_v0 }
  0x5c   :  { %609 = vmatpush3.bf16.msra.mxu0 %v679_v7  ;;  %629 = vmatpush3.bf16.msra.mxu1 %v688_v12 }
  0x5d   :  { %610 = vmatprep.subr.bf16.mxu0 %v824_v0  ;;  %630 = vmatprep.subr.bf16.mxu1 %v824_v0 }
  0x60   :  { %611 = vmatpush3.bf16.msra.mxu0 %v680_v9  ;;  %631 = vmatpush3.bf16.msra.mxu1 %v689_v14 }
  0x61   :  { %612 = vmatprep.subr.bf16.mxu0 %v824_v0  ;;  %632 = vmatprep.subr.bf16.mxu1 %v824_v0 }
  0x64   :  { %613 = vmatpush3.bf16.msra.mxu0 %v681_v11  ;;  %633 = vmatpush3.bf16.msra.mxu1 %v690_v16 }
  0x65   :  { %614 = vmatprep.subr.bf16.mxu0 %v824_v0  ;;  %634 = vmatprep.subr.bf16.mxu1 %v824_v0 }
  0x68   :  { %615 = vmatpush3.bf16.msra.mxu0 %v682_v13  ;;  %635 = vmatpush3.bf16.msra.mxu1 %v691_v17 }
  0x69   :  { %640 = vmatprep.subr.bf16.mxu0 %v824_v0  ;;  %646 = vmatprep.subr.bf16.mxu1 %v824_v0 }
  0x6b   :  { %617 = vmatmul.mubr.bf16.vlgmr.msra.gmra.mrb[0].mxu0 %v683_v15  ;;  %637 = vmatmul.mubr.bf16.vlgmr.msra.gmra.mrb[0].mxu1 %v683_v15 }
  0x6c   :  { %642 = vmatprep.mubr.msk.bf16.mxu0 %vm825_vm0, %v824_v0  ;;  %648 = vmatprep.mubr.msk.bf16.mxu1 %vm825_vm0, %v824_v0 }
 0x13e   :  { %v195_v21 = vpop.f32.mrb[0].mxu0  ;;  %v307_v30 = vpop.f32.mrb[0].mxu1 }
 0x13f   :  { %v196_v22 = vadd.f32 %v549_v20, %v195_v21  ;;  %v618_v23 = vpop.f32.mrb[1].mxu0  ;;  %v308_v31 = vadd.f32 %v559_v29, %v307_v30  ;;  %v638_v32 = vpop.f32.mrb[1].mxu1 }
 0x140   :  { %v198_v24 = vpop.f32.mrb[2].mxu0  ;;  %v310_v33 = vpop.f32.mrb[2].mxu1 }
 0x141   :  { %v314_v25 = vpack.c.bf16 %v196_v22, %v196_v22  ;;  %v199_v26 = vadd.f32 %v549_v20, %v198_v24  ;;  %v619_v27 = vpop.f32.mrb[3].mxu0  ;;  %v316_v34 = vpack.c.bf16 %v308_v31, %v308_v31  ;;  %v311_v35 = vadd.f32 %v559_v29, %v310_v33  ;;  %v639_v36 = vpop.f32.mrb[3].mxu1 }
 0x143   :  { %v315_v28 = vpack.c.bf16 %v199_v26, %v199_v26  ;;  %641 = vmatpush3.bf16.xpose.msra.mxu0 %v314_v25  ;;  %v430_v37 = vsel %vm428_vm1, %v316_v34, 0  ;;  %v317_v38 = vpack.c.bf16 %v311_v35, %v311_v35 }
 0x144   :  { %652 = vmatprep.subr.bf16.mxu0 %v824_v0 }
 0x145   :  { %647 = vmatpush3.bf16.xpose.msra.mxu1 %v315_v28  ;;  %v476_v39 = vsel %vm428_vm1, %v317_v38, 0 }
 0x146   :  { %658 = vmatprep.subr.bf16.mxu1 %v824_v0 }
 0x14a   :  { %643 = vmatmul.mubr.bf16.vlgmr.msra.gmra.mrb[4].mxu0 %v82_v18 }
 0x14b   :  { %654 = vmatprep.mubr.msk.bf16.mxu0 %vm825_vm0, %v824_v0  ;;  %653 = vmatpush3.bf16.msra.mxu0 %v430_v37 }
 0x14c   :  { %649 = vmatmul.mubr.bf16.vlgmr.msra.gmra.mrb[4].mxu1 %v83_v19 }
 0x14d   :  { %660 = vmatprep.mubr.msk.bf16.mxu1 %vm825_vm0, %v824_v0  ;;  %659 = vmatpush3.bf16.msra.mxu1 %v476_v39 }
 0x21d   :  { %v352_v40 = vpop.f32.mrb[4].mxu0 }
 0x21e   :  { %v398_v41 = vmul.f32 0.088388346, %v352_v40  ;;  %v644_v42 = vpop.f32.mrb[5].mxu0 }
 0x21f   :  { %v355_v43 = vpop.f32.mrb[6].mxu0  ;;  %v392_v44 = vpop.f32.mrb[4].mxu1 }
 0x220   :  { %v399_v45 = vmul.f32 0.088388346, %v392_v44  ;;  %v645_v46 = vpop.f32.mrb[7].mxu0  ;;  %v650_v47 = vpop.f32.mrb[5].mxu1  ;;  %v401_v48 = vsel %vm400_vm2, %v398_v41, -inf }
 0x221   :  { %v395_v49 = vpop.f32.mrb[6].mxu1  ;;  %402 = vmax.xlane.f32.xlu0 %v401_v48 }
 0x222   :  { %v651_v50 = vpop.f32.mrb[7].mxu1  ;;  %v404_v51 = vsel %vm400_vm2, %v399_v45, -inf }
 0x225   :  { %405 = vmax.xlane.f32.xlu0 %v404_v51 }
 0x2ae   :  { %v403_v52 = vpop.xlane.xlu0 %402 }
 0x2af   :  { %v407_v53 = vsub.f32 %v398_v41, %v403_v52 }
 0x2b1   :  { %v409_v54 = vmul.f32 1.442695, %v407_v53 }
 0x2b2   :  { %v406_v55 = vpop.xlane.xlu0 %405 }
 0x2b3   :  { %692 = vpow2.f32 %v409_v54  ;;  %v408_v56 = vsub.f32 %v399_v45, %v406_v55 }
 0x2b5   :  { %v411_v57 = vmul.f32 1.442695, %v408_v56 }
 0x2b7   :  { %694 = vpow2.f32 %v411_v57 }
 0x2bd   :  { %v693_v58 = vpop.eup %692 }
 0x2be   :  { %v413_v59 = vsel %vm400_vm2, %v693_v58, 0.0 }
 0x2bf   :  { %414 = vadd.xlane.f32.xlu1 %v413_v59 }
 0x2c1   :  { %v695_v60 = vpop.eup %694 }
 0x2c2   :  { %v416_v61 = vsel %vm400_vm2, %v695_v60, 0.0 }
 0x2c3   :  { %417 = vadd.xlane.f32.xlu1 %v416_v61 }
 0x34c   :  { %v415_v62 = vpop.xlane.xlu1 %414 }
 0x34d   :  { %696 = vrcp.f32 %v415_v62 }
 0x350   :  { %v418_v63 = vpop.xlane.xlu1 %417 }
 0x351   :  { %698 = vrcp.f32 %v418_v63 }
 0x357   :  { %v697_v0 = vpop.eup %696 }
 0x358   :  { %v421_v1 = vmul.f32 %v697_v0, %v693_v58 }
 0x35a   :  { %v423_v2 = vpack.c.bf16 %v421_v1, %v421_v1 }
 0x35b   :  { %v699_v3 = vpop.eup %698 }
 0x35c   :  { %v422_v4 = vmul.f32 %v699_v3, %v695_v60  ;;  %655 = vmatmul.mubr.msk.bf16.vlgmr.msra.gmra.mrb[8].mxu0 %vm400_vm2, %v423_v2 }
 0x35e   :  { %v424_v5 = vpack.c.bf16 %v422_v4, %v422_v4 }
 0x360   :  { %661 = vmatmul.mubr.msk.bf16.vlgmr.msra.gmra.mrb[8].mxu1 %vm400_vm2, %v424_v5 }
 0x42f   :  { %v466_v6 = vpop.f32.mrb[8].mxu0 }
 0x430   :  { %v572_v7 = vpack.c.bf16 %v466_v6, %v466_v6  ;;  %v656_v8 = vpop.f32.mrb[9].mxu0 }
 0x431   :  { %v469_v9 = vpop.f32.mrb[10].mxu0 }
 0x432   :  { %528 = vst [vmem:[#allocation10 + $0x4] sm:$0xf] %v572_v7  ;;  %v657_v10 = vpop.f32.mrb[11].mxu0 }
 0x433   :  { %v512_v11 = vpop.f32.mrb[8].mxu1 }
 0x434   :  { %v573_v12 = vpack.c.bf16 %v512_v11, %v512_v11  ;;  %v662_v13 = vpop.f32.mrb[9].mxu1 }
 0x435   :  { %v515_v14 = vpop.f32.mrb[10].mxu1 }
 0x436   :  { %529 = vst [vmem:[#allocation10 + $0xc] sm:$0xf] %v573_v12  ;;  %v663_v15 = vpop.f32.mrb[11].mxu1 }
 0x437   :  { %799 = shalt.err (!%p796_p8)
}
 0x438   :  { %s800_s26 = scalar_lea.hbm %s1000_s6, 256 }
 0x439   :  { %p801_p9 = scmp.ne.s32.totalorder %s1000_s6, %s800_s26  ;;  %p804_p10 = scmp.lt.u32.totalorder %s800_s26, %s1000_s6 }
 0x43b   :  { %p806_p11 = pnand %p804_p10, %p801_p9 }
 0x43d   :  { %809 = shalt.err (!%p806_p11)
}
 0x43e   :  { %s827_s7 = smov 128   ;;  %s828_s8 = smov 8  }
 0x43f   :  { %541 = dma.vmem_to_hbm [thread:$0]  %s536_s5, 256, %s1000_s6, [#allocation4], %s827_s7, %s827_s7, %s828_s8  }
 0x440   :  { %816 = dma.done.wait [#allocation4], 256  }
 0x441   :  { %817 = vsyncadd [#allocation4], 4294967040 }
 0x442   :  { %545 = vsyncpa [#allocation3], 1 }
 0x443   :  { %546 = vsyncpa [#allocation6], 1 }
 0x444   :  { %547 = vsyncpa [#allocation9], 1 }
 0x445   :  { %548 = vsyncpa [#allocation4], 1 }

</bundles_post_ra>
